<compile_context>
chip_gen: v5e
topology: v5e:2x2
jax: 0.10.0
libtpu: 0.0.40
codegen_flags: <defaults>
</compile_context>

<pallas_src>
import functools

import jax
import jax.numpy as jnp
from jax.experimental import pallas as pl
from jax.experimental.pallas import tpu as pltpu


def _round_up(n, m):
    return ((n + m - 1) // m) * m


def _block_diag(w, pack):
    """(K, N) -> (pack*K, pack*N) with `w` repeated along the diagonal."""
    k, n = w.shape
    eye = jnp.eye(pack, dtype=w.dtype)
    return (eye[:, None, :, None] * w[None, :, None, :]).reshape(pack * k, pack * n)


def _q_critic_kernel(x_ref, w1_ref, b1_ref, w2_ref, b2_ref, w3_ref, b3_ref, q_ref):
    """One tile of packed samples.

    x_ref : (TR, pack*D_in) in the compute dtype (bf16 or f32)
    w*_ref: block-diagonal weights (compute dtype); b*_ref: f32 bias rows
    q_ref : (TR, pack) f32 -- row r, lane p holds Q of sample r*pack + p.
    """
    f32 = jnp.float32
    x = x_ref[...]                                                  # (TR, pack*D_in)
    h1 = jnp.dot(x, w1_ref[...], preferred_element_type=f32)        # MXU, f32 acc
    h1 = jnp.maximum(h1 + b1_ref[...], 0.0)                         # bias+ReLU in f32
    h2 = jnp.dot(h1.astype(w2_ref.dtype), w2_ref[...],
                 preferred_element_type=f32)
    h2 = jnp.maximum(h2 + b2_ref[...], 0.0)
    # Final projection: block-diagonal (pack*H, pack) matmul -> (TR, pack),
    # already in sample-major layout (no sublane->lane relayout needed).
    q = jnp.dot(h2.astype(w3_ref.dtype), w3_ref[...],
                preferred_element_type=f32)
    q_ref[...] = (q + b3_ref[...]).astype(q_ref.dtype)


@functools.partial(jax.jit, static_argnames=("block_m", "pack", "use_bf16"))
def q_critic_forward(x, params, block_m=4096, pack=8, use_bf16=True):
    """Pallas wrapper.

    block_m: batch-tile size in *samples* (sweep 2048-8192 for large batches).
    pack   : samples packed per vreg row (8 for v6e/v7x, 4 also fine for v5e).
    """
    w1, b1, w2, b2, w3, b3 = params
    B, D_in = x.shape
    H = w1.shape[1]
    compute_dtype = jnp.bfloat16 if use_bf16 else jnp.float32

    # --- pack samples: (B, D_in) -> (rows, pack*D_in) ------------------------
    B_pack = _round_up(B, pack)
    if B_pack != B:
        # TODO(synk): only triggers when B % pack != 0; keep production batches
        # pack-aligned (or handle the tail in a tiny second call) to avoid this
        # whole-array pad copy.
        x = jnp.pad(x, ((0, B_pack - B), (0, 0)))
    rows = B_pack // pack
    # Free row-major reshape; the bf16 cast ideally fuses with x's producer
    # (pass x already in bf16 to actually halve the HBM stream).
    xp = x.reshape(rows, pack * D_in).astype(compute_dtype)

    # --- block-diagonal weights (built once, tiny) ----------------------------
    w1_blk = _block_diag(w1.astype(compute_dtype), pack)      # (pack*D_in, pack*H)
    w2_blk = _block_diag(w2.astype(compute_dtype), pack)      # (pack*H,   pack*H)
    w3_blk = _block_diag(w3.astype(compute_dtype), pack)      # (pack*H,   pack)
    b1_blk = jnp.tile(b1.reshape(1, H).astype(jnp.float32), (1, pack))
    b2_blk = jnp.tile(b2.reshape(1, H).astype(jnp.float32), (1, pack))
    b3_blk = jnp.tile(b3.reshape(1, 1).astype(jnp.float32), (1, pack))

    # --- batch tiling (in packed rows) ----------------------------------------
    if rows < 8:
        block_rows = rows                      # single full-extent tile
    else:
        target_rows = _round_up(max(block_m // pack, 8), 8)
        # Prefer >= 2 tiles when possible so v7x's two TensorCores both get
        # work on the "parallel" grid axis; don't blindly max the tile.
        two_tile_rows = _round_up(pl.cdiv(rows, 2), 8)
        block_rows = max(8, min(target_rows, two_tile_rows))
    num_tiles = pl.cdiv(rows, block_rows)      # ragged last tile handled by
                                               # Pallas boundary masking (no pad)
    d_pack = pack * D_in
    h_pack = pack * H

    def _full(shape):
        return pl.BlockSpec(shape, lambda i: (0, 0))

    q_packed = pl.pallas_call(
        _q_critic_kernel,
        out_shape=jax.ShapeDtypeStruct((rows, pack), jnp.float32),
        grid_spec=pltpu.PrefetchScalarGridSpec(
            num_scalar_prefetch=0,
            grid=(num_tiles,),
            in_specs=[
                pl.BlockSpec((block_rows, d_pack), lambda i: (i, 0)),  # x tile
                _full((d_pack, h_pack)),   # w1 (block-diag)
                _full((1, h_pack)),        # b1 (tiled)
                _full((h_pack, h_pack)),   # w2 (block-diag)
                _full((1, h_pack)),        # b2 (tiled)
                _full((h_pack, pack)),     # w3 (block-diag)
                _full((1, pack)),          # b3 (tiled) -- folded into the kernel
            ],
            out_specs=pl.BlockSpec((block_rows, pack), lambda i: (i, 0)),
        ),
        compiler_params=pltpu.CompilerParams(
            dimension_semantics=("parallel",)),
    )(xp, w1_blk, b1_blk, w2_blk, b2_blk, w3_blk, b3_blk)

    # (rows, pack) is row-major sample order -> free reshape back to (B, 1).
    return q_packed.reshape(B_pack)[:B].reshape(B, 1)


def q_critic_q(obs, action, agent_id, params, **kwargs):
    """Equivalent of Q_critic.q(): concat inputs on the feature axis, then forward."""
    x = jnp.concatenate([obs, action, agent_id], axis=-1)
    return q_critic_forward(x, params, **kwargs)


def init_q_critic_params(key, num_state, num_action, num_agent, num_hidden):
    """Deterministic init mimicking PyTorch nn.Linear (uniform +/- 1/sqrt(fan_in)).

    Returns weights in [in, out] layout.
    """
    d_in = num_state + num_action + num_agent
    keys = jax.random.split(key, 6)

    def lin(kw, kb, fan_in, fan_out):
        bound = 1.0 / jnp.sqrt(jnp.float32(fan_in))
        w = jax.random.uniform(kw, (fan_in, fan_out), jnp.float32,
                               minval=-bound, maxval=bound)
        b = jax.random.uniform(kb, (1, fan_out), jnp.float32,
                               minval=-bound, maxval=bound)
        return w, b

    w1, b1 = lin(keys[0], keys[1], d_in, num_hidden)
    w2, b2 = lin(keys[2], keys[3], num_hidden, num_hidden)
    w3, b3 = lin(keys[4], keys[5], num_hidden, 1)
    return (w1, b1, w2, b2, w3, b3)


def q_critic_reference(x, params):
    """Plain-JAX f32 reference for verification."""
    w1, b1, w2, b2, w3, b3 = params
    h1 = jnp.maximum(x @ w1 + b1, 0.0)
    h2 = jnp.maximum(h1 @ w2 + b2, 0.0)
    return h2 @ w3 + b3


if __name__ == "__main__":
    # Small, module-consistent shapes.
    num_state, num_action, num_agent, num_hidden = 16, 8, 4, 32
    d_in = num_state + num_action + num_agent  # 28

    key = jax.random.PRNGKey(0)
    k_x1, k_x2, k_x3, k_p = jax.random.split(key, 4)
    params = init_q_critic_params(k_p, num_state, num_action, num_agent,
                                  num_hidden)

    # Test 1: tiny batch, exact f32 path (single packed row, full-extent tile).
    x1 = jax.random.normal(k_x1, (8, d_in), dtype=jnp.float32)
    q1 = q_critic_forward(x1, params, use_bf16=False)
    jax.block_until_ready(q1)
    q1_ref = q_critic_reference(x1, params)
    assert q1.shape == (8, 1)
    assert jnp.allclose(q1, q1_ref, atol=2e-4, rtol=2e-4), "f32 mismatch vs reference"

    # Test 2: ragged batch + bf16 streaming + multi-tile parallel grid with a
    # masked boundary tile (300 samples -> 38 packed rows, 3 tiles of 16 rows).
    x2 = jax.random.normal(k_x2, (300, d_in), dtype=jnp.float32)
    q2 = q_critic_forward(x2, params, block_m=128)
    jax.block_until_ready(q2)
    q2_ref = q_critic_reference(x2, params)
    assert q2.shape == (300, 1)
    assert jnp.allclose(q2, q2_ref, atol=2e-2, rtol=2e-2), "bf16 mismatch vs reference"

    # Test 3: pack-aligned batch, no padding anywhere, 2 even tiles
    # (exercises the >=2-tile preference for v7x megacore).
    x3 = jax.random.normal(k_x3, (256, d_in), dtype=jnp.float32)
    q3 = q_critic_forward(x3, params)
    jax.block_until_ready(q3)
    q3_ref = q_critic_reference(x3, params)
    assert q3.shape == (256, 1)
    assert jnp.allclose(q3, q3_ref, atol=2e-2, rtol=2e-2), "bf16 mismatch vs reference"

    print("KERNEL_OK")
</pallas_src>

<mosaic_0001>
module attributes {stable_mosaic.version = 11 : i64} {
  func.func @_q_critic_kernel(%arg0: i32, %arg1: memref<1x224xf32, #tpu.memory_space<vmem>>, %arg2: memref<224x256xf32, #tpu.memory_space<vmem>>, %arg3: memref<1x256xf32, #tpu.memory_space<vmem>>, %arg4: memref<256x256xf32, #tpu.memory_space<vmem>>, %arg5: memref<1x256xf32, #tpu.memory_space<vmem>>, %arg6: memref<256x8xf32, #tpu.memory_space<vmem>>, %arg7: memref<1x8xf32, #tpu.memory_space<vmem>>, %arg8: memref<1x8xf32, #tpu.memory_space<vmem>>) attributes {dimension_semantics = [#tpu.dimension_semantics<parallel>], iteration_bounds = array<i64: 1>, scalar_prefetch = 0 : i64, scratch_operands = 0 : i64, tpu.core_type = #tpu.core_type<tc>, window_params = [{transform_indices = @transform_0, window_bounds = array<i64: 1, 224>}, {pipeline_mode = #tpu.pipeline_mode<synchronous>, transform_indices = @transform_1, window_bounds = array<i64: 224, 256>}, {pipeline_mode = #tpu.pipeline_mode<synchronous>, transform_indices = @transform_2, window_bounds = array<i64: 1, 256>}, {pipeline_mode = #tpu.pipeline_mode<synchronous>, transform_indices = @transform_3, window_bounds = array<i64: 256, 256>}, {pipeline_mode = #tpu.pipeline_mode<synchronous>, transform_indices = @transform_4, window_bounds = array<i64: 1, 256>}, {pipeline_mode = #tpu.pipeline_mode<synchronous>, transform_indices = @transform_5, window_bounds = array<i64: 256, 8>}, {pipeline_mode = #tpu.pipeline_mode<synchronous>, transform_indices = @transform_6, window_bounds = array<i64: 1, 8>}, {transform_indices = @transform_7, window_bounds = array<i64: 1, 8>}]} {
    %c0 = arith.constant 0 : index
    %c0_0 = arith.constant 0 : index
    %0 = vector.load %arg1[%c0, %c0_0] : memref<1x224xf32, #tpu.memory_space<vmem>>, vector<1x224xf32>
    %c0_1 = arith.constant 0 : index
    %c0_2 = arith.constant 0 : index
    %1 = vector.load %arg2[%c0_1, %c0_2] : memref<224x256xf32, #tpu.memory_space<vmem>>, vector<224x256xf32>
    %cst = arith.constant dense<0.000000e+00> : vector<1x256xf32>
    %2 = tpu.matmul %0, %1, %cst {dimension_numbers = #tpu.dot_dimension_numbers<[1], [0], [0], [1], [0, 0, 1, 1], [], []>} : vector<1x224xf32>, vector<224x256xf32>, vector<1x256xf32> -> vector<1x256xf32>
    %c0_3 = arith.constant 0 : index
    %c0_4 = arith.constant 0 : index
    %3 = vector.load %arg3[%c0_3, %c0_4] : memref<1x256xf32, #tpu.memory_space<vmem>>, vector<1x256xf32>
    %4 = arith.addf %2, %3 : vector<1x256xf32>
    %cst_5 = arith.constant 0.000000e+00 : f32
    %5 = vector.broadcast %cst_5 : f32 to vector<1x256xf32>
    %6 = arith.maximumf %4, %5 : vector<1x256xf32>
    %c0_6 = arith.constant 0 : index
    %c0_7 = arith.constant 0 : index
    %7 = vector.load %arg4[%c0_6, %c0_7] : memref<256x256xf32, #tpu.memory_space<vmem>>, vector<256x256xf32>
    %cst_8 = arith.constant dense<0.000000e+00> : vector<1x256xf32>
    %8 = tpu.matmul %6, %7, %cst_8 {dimension_numbers = #tpu.dot_dimension_numbers<[1], [0], [0], [1], [0, 0, 1, 1], [], []>} : vector<1x256xf32>, vector<256x256xf32>, vector<1x256xf32> -> vector<1x256xf32>
    %c0_9 = arith.constant 0 : index
    %c0_10 = arith.constant 0 : index
    %9 = vector.load %arg5[%c0_9, %c0_10] : memref<1x256xf32, #tpu.memory_space<vmem>>, vector<1x256xf32>
    %10 = arith.addf %8, %9 : vector<1x256xf32>
    %cst_11 = arith.constant 0.000000e+00 : f32
    %11 = vector.broadcast %cst_11 : f32 to vector<1x256xf32>
    %12 = arith.maximumf %10, %11 : vector<1x256xf32>
    %c0_12 = arith.constant 0 : index
    %c0_13 = arith.constant 0 : index
    %13 = vector.load %arg6[%c0_12, %c0_13] : memref<256x8xf32, #tpu.memory_space<vmem>>, vector<256x8xf32>
    %cst_14 = arith.constant dense<0.000000e+00> : vector<1x8xf32>
    %14 = tpu.matmul %12, %13, %cst_14 {dimension_numbers = #tpu.dot_dimension_numbers<[1], [0], [0], [1], [0, 0, 1, 1], [], []>} : vector<1x256xf32>, vector<256x8xf32>, vector<1x8xf32> -> vector<1x8xf32>
    %c0_15 = arith.constant 0 : index
    %c0_16 = arith.constant 0 : index
    %15 = vector.load %arg7[%c0_15, %c0_16] : memref<1x8xf32, #tpu.memory_space<vmem>>, vector<1x8xf32>
    %16 = arith.addf %14, %15 : vector<1x8xf32>
    %c0_17 = arith.constant 0 : index
    %c0_18 = arith.constant 0 : index
    %17 = vector.load %arg8[%c0_17, %c0_18] : memref<1x8xf32, #tpu.memory_space<vmem>>, vector<1x8xf32>
    tpu.vector_store %arg8[%c0_17, %c0_18], %16 {strides = array<i32>} : memref<1x8xf32, #tpu.memory_space<vmem>>, vector<1x8xf32>,
    return
  }
  func.func @transform_0(%arg0: i32) -> (i32, i32) {
    %c0_i32 = arith.constant 0 : i32
    %c0_i32_0 = arith.constant 0 : i32
    return %arg0, %c0_i32 : i32, i32
  }
  func.func @transform_1(%arg0: i32) -> (i32, i32) {
    %c0_i32 = arith.constant 0 : i32
    %c0_i32_0 = arith.constant 0 : i32
    %c0_i32_1 = arith.constant 0 : i32
    return %c0_i32, %c0_i32_0 : i32, i32
  }
  func.func @transform_2(%arg0: i32) -> (i32, i32) {
    %c0_i32 = arith.constant 0 : i32
    %c0_i32_0 = arith.constant 0 : i32
    %c0_i32_1 = arith.constant 0 : i32
    return %c0_i32, %c0_i32_0 : i32, i32
  }
  func.func @transform_3(%arg0: i32) -> (i32, i32) {
    %c0_i32 = arith.constant 0 : i32
    %c0_i32_0 = arith.constant 0 : i32
    %c0_i32_1 = arith.constant 0 : i32
    return %c0_i32, %c0_i32_0 : i32, i32
  }
  func.func @transform_4(%arg0: i32) -> (i32, i32) {
    %c0_i32 = arith.constant 0 : i32
    %c0_i32_0 = arith.constant 0 : i32
    %c0_i32_1 = arith.constant 0 : i32
    return %c0_i32, %c0_i32_0 : i32, i32
  }
  func.func @transform_5(%arg0: i32) -> (i32, i32) {
    %c0_i32 = arith.constant 0 : i32
    %c0_i32_0 = arith.constant 0 : i32
    %c0_i32_1 = arith.constant 0 : i32
    return %c0_i32, %c0_i32_0 : i32, i32
  }
  func.func @transform_6(%arg0: i32) -> (i32, i32) {
    %c0_i32 = arith.constant 0 : i32
    %c0_i32_0 = arith.constant 0 : i32
    %c0_i32_1 = arith.constant 0 : i32
    return %c0_i32, %c0_i32_0 : i32, i32
  }
  func.func @transform_7(%arg0: i32) -> (i32, i32) {
    %c0_i32 = arith.constant 0 : i32
    %c0_i32_0 = arith.constant 0 : i32
    return %arg0, %c0_i32 : i32, i32
  }
}

</mosaic_0001>

<bundles_post_ra>
// kernel: q_critic_forward.1
= control target key start
LH: loop header
LB: loop body
LE: loop exit
PB: predicated region body
PF: predicated region fallthrough
CT: control target
= control target key end

     0   :  { %vm94_vm0 = vcmask 785408   ;;  %s965_s0 = inlined_call_operand.vmem [shape: f32[1,224], index: 0, kind: input, shape index: {}]   ;;  %s966_s1 = inlined_call_operand.vmem [shape: f32[224,256], index: 1, kind: input, shape index: {}]   ;;  %s967_s2 = inlined_call_operand.vmem [shape: f32[1,256], index: 2, kind: input, shape index: {}]   ;;  %s968_s3 = inlined_call_operand.vmem [shape: f32[256,256], index: 3, kind: input, shape index: {}]   ;;  %s969_s4 = inlined_call_operand.vmem [shape: f32[1,256], index: 4, kind: input, shape index: {}]   ;;  %s970_s5 = inlined_call_operand.vmem [shape: f32[256,8], index: 5, kind: input, shape index: {}]   ;;  %s971_s6 = inlined_call_operand.vmem [shape: f32[1,8], index: 6, kind: input, shape index: {}]   ;;  %s972_s7 = inlined_call_operand.hbm [shape: f32[1,8], index: 7, kind: output, shape index: {}]  }
   0x1   :  { %v59_v0 = vld [vmem:[%s966_s1 + $0xf8] sm:$0xff]  ;;  %v57_v1 = vld [vmem:[%s966_s1 + $0xe8] sm:$0xff]  ;;  %v58_v2 = vld [vmem:[%s966_s1 + $0xf0] sm:$0xff] }
   0x2   :  { %137 = vmatpush.msra.mxu2 %v59_v0  ;;  %v55_v3 = vld [vmem:[%s966_s1 + $0xd8] sm:$0xff]  ;;  %97 = vmatpush.msra.mxu0 %v58_v2  ;;  %v56_v5 = vld [vmem:[%s966_s1 + $0xe0] sm:$0xff]  ;;  %v81_v6 = vld [vmem:[%s966_s1 + $0x1a8] sm:$0xff] }
   0x3   :  { %v83_v4 = vld [vmem:[%s966_s1 + $0x1b8] sm:$0xff]  ;;  %v54_v7 = vld [vmem:[%s966_s1 + $0xd0] sm:$0xff]  ;;  %v53_v8 = vld [vmem:[%s966_s1 + $0xc8] sm:$0xff] }
   0x4   :  { %138 = vmatpush.msra.mxu2 %v57_v1  ;;  %161 = vmatpush.msra.mxu3 %v83_v4  ;;  %v79_v9 = vld [vmem:[%s966_s1 + $0x198] sm:$0xff]  ;;  %v52_v10 = vld [vmem:[%s966_s1 + $0xc0] sm:$0xff]  ;;  %v77_v12 = vld [vmem:[%s966_s1 + $0x188] sm:$0xff] }
   0x5   :  { %98 = vmatpush.msra.mxu0 %v56_v5  ;;  %v51_v11 = vld [vmem:[%s966_s1 + $0xb8] sm:$0xff]  ;;  %v50_v13 = vld [vmem:[%s966_s1 + $0xb0] sm:$0xff]  ;;  %v49_v15 = vld [vmem:[%s966_s1 + $0xa8] sm:$0xff] }
   0x6   :  { %139 = vmatpush.msra.mxu2 %v55_v3  ;;  %162 = vmatpush.msra.mxu3 %v81_v6  ;;  %v82_v14 = vld [vmem:[%s966_s1 + $0x1b0] sm:$0xff]  ;;  %v75_v16 = vld [vmem:[%s966_s1 + $0x178] sm:$0xff]  ;;  %v80_v17 = vld [vmem:[%s966_s1 + $0x1a0] sm:$0xff] }
   0x7   :  { %99 = vmatpush.msra.mxu0 %v54_v7  ;;  %121 = vmatpush.msra.mxu1 %v82_v14  ;;  %v48_v18 = vld [vmem:[%s966_s1 + $0xa0] sm:$0xff]  ;;  %v78_v19 = vld [vmem:[%s966_s1 + $0x190] sm:$0xff]  ;;  %v47_v20 = vld [vmem:[%s966_s1 + $0x98] sm:$0xff] }
   0x8   :  { %140 = vmatpush.msra.mxu2 %v53_v8  ;;  %163 = vmatpush.msra.mxu3 %v79_v9  ;;  %v73_v21 = vld [vmem:[%s966_s1 + $0x168] sm:$0xff]  ;;  %v46_v22 = vld [vmem:[%s966_s1 + $0x90] sm:$0xff]  ;;  %v76_v23 = vld [vmem:[%s966_s1 + $0x180] sm:$0xff] }
   0x9   :  { %100 = vmatpush.msra.mxu0 %v52_v10  ;;  %122 = vmatpush.msra.mxu1 %v80_v17  ;;  %v45_v24 = vld [vmem:[%s966_s1 + $0x88] sm:$0xff]  ;;  %v71_v25 = vld [vmem:[%s966_s1 + $0x158] sm:$0xff]  ;;  %v44_v26 = vld [vmem:[%s966_s1 + $0x80] sm:$0xff] }
   0xa   :  { %141 = vmatpush.msra.mxu2 %v51_v11  ;;  %164 = vmatpush.msra.mxu3 %v77_v12  ;;  %v74_v27 = vld [vmem:[%s966_s1 + $0x170] sm:$0xff]  ;;  %v43_v28 = vld [vmem:[%s966_s1 + $0x78] sm:$0xff]  ;;  %v69_v29 = vld [vmem:[%s966_s1 + $0x148] sm:$0xff] }
   0xb   :  { %101 = vmatpush.msra.mxu0 %v50_v13  ;;  %123 = vmatpush.msra.mxu1 %v78_v19  ;;  %v42_v30 = vld [vmem:[%s966_s1 + $0x70] sm:$0xff]  ;;  %v72_v31 = vld [vmem:[%s966_s1 + $0x160] sm:$0xff]  ;;  %v41_v32 = vld [vmem:[%s966_s1 + $0x68] sm:$0xff] }
   0xc   :  { %142 = vmatpush.msra.mxu2 %v49_v15  ;;  %165 = vmatpush.msra.mxu3 %v75_v16  ;;  %v67_v33 = vld [vmem:[%s966_s1 + $0x138] sm:$0xff]  ;;  %v40_v34 = vld [vmem:[%s966_s1 + $0x60] sm:$0xff]  ;;  %v70_v35 = vld [vmem:[%s966_s1 + $0x150] sm:$0xff] }
   0xd   :  { %102 = vmatpush.msra.mxu0 %v48_v18  ;;  %124 = vmatpush.msra.mxu1 %v76_v23  ;;  %v39_v36 = vld [vmem:[%s966_s1 + $0x58] sm:$0xff]  ;;  %v65_v37 = vld [vmem:[%s966_s1 + $0x128] sm:$0xff]  ;;  %v38_v38 = vld [vmem:[%s966_s1 + $0x50] sm:$0xff] }
   0xe   :  { %143 = vmatpush.msra.mxu2 %v47_v20  ;;  %166 = vmatpush.msra.mxu3 %v73_v21  ;;  %v68_v39 = vld [vmem:[%s966_s1 + $0x140] sm:$0xff]  ;;  %v37_v40 = vld [vmem:[%s966_s1 + $0x48] sm:$0xff]  ;;  %v63_v41 = vld [vmem:[%s966_s1 + $0x118] sm:$0xff] }
   0xf   :  { %103 = vmatpush.msra.mxu0 %v46_v22  ;;  %125 = vmatpush.msra.mxu1 %v74_v27  ;;  %v27_v42 = vld [vmem:[%s965_s0] sm:$0x3]  ;;  %v66_v44 = vld [vmem:[%s966_s1 + $0x130] sm:$0xff]  ;;  %v35_v45 = vld [vmem:[%s966_s1 + $0x38] sm:$0xff] }
  0x10   :  { %144 = vmatpush.msra.mxu2 %v45_v24  ;;  %167 = vmatpush.msra.mxu3 %v71_v25  ;;  %v36_v43 = vld [vmem:[%s966_s1 + $0x40] sm:$0xff]  ;;  %v87_v46 = vperm.slane %v27_v42, 1  ;;  %v61_v47 = vld [vmem:[%s966_s1 + $0x108] sm:$0xff]  ;;  %v34_v48 = vld [vmem:[%s966_s1 + $0x30] sm:$0xff]  ;;  %v86_v58 = vperm.slane %v27_v42, 0 }
  0x11   :  { %104 = vmatpush.msra.mxu0 %v44_v26  ;;  %126 = vmatpush.msra.mxu1 %v72_v31  ;;  %v33_v49 = vld [vmem:[%s966_s1 + $0x28] sm:$0xff]  ;;  %v64_v50 = vld [vmem:[%s966_s1 + $0x120] sm:$0xff]  ;;  %v241_v52 = vld [vmem:[%s968_s3 + $0x1f0] sm:$0xff] }
  0x12   :  { %145 = vmatpush.msra.mxu2 %v43_v28  ;;  %168 = vmatpush.msra.mxu3 %v69_v29  ;;  %v32_v51 = vld [vmem:[%s966_s1 + $0x20] sm:$0xff]  ;;  %v31_v53 = vld [vmem:[%s966_s1 + $0x18] sm:$0xff]  ;;  %v62_v54 = vld [vmem:[%s966_s1 + $0x110] sm:$0xff] }
  0x13   :  { %105 = vmatpush.msra.mxu0 %v42_v30  ;;  %127 = vmatpush.msra.mxu1 %v70_v35  ;;  %v30_v55 = vld [vmem:[%s966_s1 + $0x10] sm:$0xff]  ;;  %v239_v56 = vld [vmem:[%s968_s3 + $0x1e0] sm:$0xff]  ;;  %v29_v57 = vld [vmem:[%s966_s1 + $0x8] sm:$0xff] }
  0x14   :  { %146 = vmatpush.msra.mxu2 %v41_v32  ;;  %169 = vmatpush.msra.mxu3 %v67_v33  ;;  %v60_v59 = vld [vmem:[%s966_s1 + $0x100] sm:$0xff]  ;;  %v242_v61 = vld [vmem:[%s968_s3 + $0x1f8] sm:$0xff]  ;;  %v209_v62 = vld [vmem:[%s968_s3 + $0xf0] sm:$0xff] }
  0x15   :  { %106 = vmatpush.msra.mxu0 %v40_v34  ;;  %128 = vmatpush.msra.mxu1 %v68_v39  ;;  %v28_v60 = vld [vmem:[%s966_s1] sm:$0xff]  ;;  %v237_v63 = vld [vmem:[%s968_s3 + $0x1d0] sm:$0xff]  ;;  %v210_v0 = vld [vmem:[%s968_s3 + $0xf8] sm:$0xff] }
  0x16   :  { %147 = vmatpush.msra.mxu2 %v39_v36  ;;  %170 = vmatpush.msra.mxu3 %v65_v37  ;;  %v240_v1 = vld [vmem:[%s968_s3 + $0x1e8] sm:$0xff]  ;;  %v207_v2 = vld [vmem:[%s968_s3 + $0xe0] sm:$0xff] }
  0x17   :  { %107 = vmatpush.msra.mxu0 %v38_v38  ;;  %129 = vmatpush.msra.mxu1 %v66_v44  ;;  %v235_v3 = vld [vmem:[%s968_s3 + $0x1c0] sm:$0xff]  ;;  %v208_v4 = vld [vmem:[%s968_s3 + $0xe8] sm:$0xff] }
  0x18   :  { %148 = vmatpush.msra.mxu2 %v37_v40  ;;  %171 = vmatpush.msra.mxu3 %v63_v41 }
  0x19   :  { %108 = vmatpush.msra.mxu0 %v36_v43  ;;  %130 = vmatpush.msra.mxu1 %v64_v50 }
  0x1a   :  { %149 = vmatpush.msra.mxu2 %v35_v45  ;;  %172 = vmatpush.msra.mxu3 %v61_v47 }
  0x1b   :  { %423 = vmatmul.msk.f32.vlgmr.msra.gmra.mxu3 %vm94_vm0, %v87_v46  ;;  %109 = vmatpush.msra.mxu0 %v34_v48 }
  0x1c   :  { %150 = vmatpush.msra.mxu2 %v33_v49  ;;  %269 = vmatpush.msrb.mxu3 %v241_v52 }
  0x1d   :  { %110 = vmatpush.msra.mxu0 %v32_v51  ;;  %131 = vmatpush.msra.mxu1 %v62_v54 }
  0x1e   :  { %151 = vmatpush.msra.mxu2 %v31_v53  ;;  %270 = vmatpush.msrb.mxu3 %v239_v56 }
  0x1f   :  { %111 = vmatpush.msra.mxu0 %v30_v55  ;;  %132 = vmatpush.msra.mxu1 %v60_v59 }
  0x20   :  { %152 = vmatpush.msra.mxu2 %v29_v57  ;;  %422 = vmatmul.msk.f32.vlgmr.msra.gmra.mxu1 %vm94_vm0, %v87_v46 }
  0x21   :  { %153 = vmatmul.f32.vlgmr.msra.gmra.mxu2 %v86_v58  ;;  %112 = vmatpush.msra.mxu0 %v28_v60 }
  0x22   :  { %113 = vmatmul.f32.vlgmr.msra.gmra.mxu0 %v86_v58  ;;  %309 = vmatpush.msrb.mxu2 %v242_v61 }
  0x23   :  { %249 = vmatpush.msrb.mxu1 %v209_v62 }
  0x24   :  { %12 = vsyncpa [#allocation3], 0  ;;  %271 = vmatpush.msrb.mxu3 %v237_v63  ;;  %289 = vmatpush.msrb.mxu0 %v210_v0  ;;  %v238_v5 = vld [vmem:[%s968_s3 + $0x1d8] sm:$0xff]  ;;  %v205_v6 = vld [vmem:[%s968_s3 + $0xd0] sm:$0xff]  ;;  %s413_s17 = sshll.u32 %s972_s7, 4  ;;  %vm404_vm1 = vcmask 57344   ;;  %s414_s17 = int_to_ptr.hbm [resolvable:$true] %s413_s17 }
  0x25   :  { %310 = vmatpush.msrb.mxu2 %v240_v1  ;;  %250 = vmatpush.msrb.mxu1 %v207_v2  ;;  %v233_v7 = vld [vmem:[%s968_s3 + $0x1b0] sm:$0xff]  ;;  %v206_v8 = vld [vmem:[%s968_s3 + $0xd8] sm:$0xff]  ;;  %v236_v9 = vld [vmem:[%s968_s3 + $0x1c8] sm:$0xff] }
  0x26   :  { %272 = vmatpush.msrb.mxu3 %v235_v3  ;;  %290 = vmatpush.msrb.mxu0 %v208_v4  ;;  %v203_v10 = vld [vmem:[%s968_s3 + $0xc0] sm:$0xff]  ;;  %v204_v12 = vld [vmem:[%s968_s3 + $0xc8] sm:$0xff]  ;;  %v234_v13 = vld [vmem:[%s968_s3 + $0x1b8] sm:$0xff] }
  0x27   :  { %311 = vmatpush.msrb.mxu2 %v238_v5  ;;  %251 = vmatpush.msrb.mxu1 %v205_v6  ;;  %v231_v11 = vld [vmem:[%s968_s3 + $0x1a0] sm:$0xff]  ;;  %v201_v14 = vld [vmem:[%s968_s3 + $0xb0] sm:$0xff]  ;;  %v202_v16 = vld [vmem:[%s968_s3 + $0xb8] sm:$0xff] }
  0x28   :  { %273 = vmatpush.msrb.mxu3 %v233_v7  ;;  %291 = vmatpush.msrb.mxu0 %v206_v8  ;;  %v229_v15 = vld [vmem:[%s968_s3 + $0x190] sm:$0xff]  ;;  %v232_v17 = vld [vmem:[%s968_s3 + $0x1a8] sm:$0xff]  ;;  %v199_v18 = vld [vmem:[%s968_s3 + $0xa0] sm:$0xff] }
  0x29   :  { %312 = vmatpush.msrb.mxu2 %v236_v9  ;;  %252 = vmatpush.msrb.mxu1 %v203_v10  ;;  %v227_v19 = vld [vmem:[%s968_s3 + $0x180] sm:$0xff]  ;;  %v200_v20 = vld [vmem:[%s968_s3 + $0xa8] sm:$0xff]  ;;  %v230_v21 = vld [vmem:[%s968_s3 + $0x198] sm:$0xff] }
  0x2a   :  { %274 = vmatpush.msrb.mxu3 %v231_v11  ;;  %292 = vmatpush.msrb.mxu0 %v204_v12  ;;  %v197_v22 = vld [vmem:[%s968_s3 + $0x90] sm:$0xff]  ;;  %v198_v24 = vld [vmem:[%s968_s3 + $0x98] sm:$0xff]  ;;  %v228_v25 = vld [vmem:[%s968_s3 + $0x188] sm:$0xff] }
  0x2b   :  { %313 = vmatpush.msrb.mxu2 %v234_v13  ;;  %253 = vmatpush.msrb.mxu1 %v201_v14  ;;  %v225_v23 = vld [vmem:[%s968_s3 + $0x170] sm:$0xff]  ;;  %v195_v26 = vld [vmem:[%s968_s3 + $0x80] sm:$0xff]  ;;  %v196_v28 = vld [vmem:[%s968_s3 + $0x88] sm:$0xff] }
  0x2c   :  { %275 = vmatpush.msrb.mxu3 %v229_v15  ;;  %293 = vmatpush.msrb.mxu0 %v202_v16  ;;  %v223_v27 = vld [vmem:[%s968_s3 + $0x160] sm:$0xff]  ;;  %v226_v29 = vld [vmem:[%s968_s3 + $0x178] sm:$0xff]  ;;  %v193_v30 = vld [vmem:[%s968_s3 + $0x70] sm:$0xff] }
  0x2d   :  { %314 = vmatpush.msrb.mxu2 %v232_v17  ;;  %254 = vmatpush.msrb.mxu1 %v199_v18  ;;  %v221_v31 = vld [vmem:[%s968_s3 + $0x150] sm:$0xff]  ;;  %v194_v32 = vld [vmem:[%s968_s3 + $0x78] sm:$0xff]  ;;  %v224_v33 = vld [vmem:[%s968_s3 + $0x168] sm:$0xff] }
  0x2e   :  { %276 = vmatpush.msrb.mxu3 %v227_v19  ;;  %294 = vmatpush.msrb.mxu0 %v200_v20  ;;  %v191_v34 = vld [vmem:[%s968_s3 + $0x60] sm:$0xff]  ;;  %v192_v36 = vld [vmem:[%s968_s3 + $0x68] sm:$0xff]  ;;  %v222_v37 = vld [vmem:[%s968_s3 + $0x158] sm:$0xff] }
  0x2f   :  { %315 = vmatpush.msrb.mxu2 %v230_v21  ;;  %255 = vmatpush.msrb.mxu1 %v197_v22  ;;  %v219_v35 = vld [vmem:[%s968_s3 + $0x140] sm:$0xff]  ;;  %v220_v38 = vld [vmem:[%s968_s3 + $0x148] sm:$0xff]  ;;  %v189_v39 = vld [vmem:[%s968_s3 + $0x50] sm:$0xff] }
  0x30   :  { %277 = vmatpush.msrb.mxu3 %v225_v23  ;;  %295 = vmatpush.msrb.mxu0 %v198_v24  ;;  %v217_v40 = vld [vmem:[%s968_s3 + $0x130] sm:$0xff]  ;;  %v190_v41 = vld [vmem:[%s968_s3 + $0x58] sm:$0xff]  ;;  %v187_v43 = vld [vmem:[%s968_s3 + $0x40] sm:$0xff] }
  0x31   :  { %316 = vmatpush.msrb.mxu2 %v228_v25  ;;  %256 = vmatpush.msrb.mxu1 %v195_v26  ;;  %v218_v42 = vld [vmem:[%s968_s3 + $0x138] sm:$0xff]  ;;  %v215_v44 = vld [vmem:[%s968_s3 + $0x120] sm:$0xff]  ;;  %v188_v45 = vld [vmem:[%s968_s3 + $0x48] sm:$0xff] }
  0x32   :  { %278 = vmatpush.msrb.mxu3 %v223_v27  ;;  %296 = vmatpush.msrb.mxu0 %v196_v28  ;;  %v216_v46 = vld [vmem:[%s968_s3 + $0x128] sm:$0xff]  ;;  %v185_v47 = vld [vmem:[%s968_s3 + $0x30] sm:$0xff]  ;;  %v186_v49 = vld [vmem:[%s968_s3 + $0x38] sm:$0xff] }
  0x33   :  { %317 = vmatpush.msrb.mxu2 %v226_v29  ;;  %257 = vmatpush.msrb.mxu1 %v193_v30  ;;  %v213_v48 = vld [vmem:[%s968_s3 + $0x110] sm:$0xff]  ;;  %v214_v50 = vld [vmem:[%s968_s3 + $0x118] sm:$0xff]  ;;  %v183_v51 = vld [vmem:[%s968_s3 + $0x20] sm:$0xff] }
  0x34   :  { %279 = vmatpush.msrb.mxu3 %v221_v31  ;;  %297 = vmatpush.msrb.mxu0 %v194_v32  ;;  %v211_v52 = vld [vmem:[%s968_s3 + $0x100] sm:$0xff]  ;;  %v184_v53 = vld [vmem:[%s968_s3 + $0x28] sm:$0xff]  ;;  %v181_v55 = vld [vmem:[%s968_s3 + $0x10] sm:$0xff] }
  0x35   :  { %318 = vmatpush.msrb.mxu2 %v224_v33  ;;  %258 = vmatpush.msrb.mxu1 %v191_v34  ;;  %v212_v54 = vld [vmem:[%s968_s3 + $0x108] sm:$0xff]  ;;  %v182_v56 = vld [vmem:[%s968_s3 + $0x18] sm:$0xff]  ;;  %v179_v57 = vld [vmem:[%s968_s3] sm:$0xff] }
  0x36   :  { %280 = vmatpush.msrb.mxu3 %v219_v35  ;;  %298 = vmatpush.msrb.mxu0 %v192_v36  ;;  %v180_v58 = vld [vmem:[%s968_s3 + $0x8] sm:$0xff]  ;;  %v346_v59 = vld [vmem:[%s970_s5 + $0x78] sm:$0xff]  ;;  %v361_v61 = vld [vmem:[%s970_s5 + $0xf0] sm:$0xff] }
  0x37   :  { %319 = vmatpush.msrb.mxu2 %v222_v37  ;;  %259 = vmatpush.msrb.mxu1 %v189_v39  ;;  %v362_v60 = vld [vmem:[%s970_s5 + $0xf8] sm:$0xff]  ;;  %v345_v62 = vld [vmem:[%s970_s5 + $0x70] sm:$0xff]  ;;  %v360_v63 = vld [vmem:[%s970_s5 + $0xe8] sm:$0xff] }
  0x38   :  { %281 = vmatpush.msrb.mxu3 %v217_v40  ;;  %299 = vmatpush.msrb.mxu0 %v190_v41  ;;  %v344_v0 = vld [vmem:[%s970_s5 + $0x68] sm:$0xff]  ;;  %v359_v1 = vld [vmem:[%s970_s5 + $0xe0] sm:$0xff]  ;;  %v358_v3 = vld [vmem:[%s970_s5 + $0xd8] sm:$0xff] }
  0x39   :  { %320 = vmatpush.msrb.mxu2 %v220_v38  ;;  %260 = vmatpush.msrb.mxu1 %v187_v43  ;;  %v343_v2 = vld [vmem:[%s970_s5 + $0x60] sm:$0xff]  ;;  %v342_v4 = vld [vmem:[%s970_s5 + $0x58] sm:$0xff]  ;;  %v357_v5 = vld [vmem:[%s970_s5 + $0xd0] sm:$0xff] }
  0x3a   :  { %282 = vmatpush.msrb.mxu3 %v215_v44  ;;  %300 = vmatpush.msrb.mxu0 %v188_v45  ;;  %v341_v6 = vld [vmem:[%s970_s5 + $0x50] sm:$0xff]  ;;  %v356_v7 = vld [vmem:[%s970_s5 + $0xc8] sm:$0xff]  ;;  %v355_v9 = vld [vmem:[%s970_s5 + $0xc0] sm:$0xff] }
  0x3b   :  { %321 = vmatpush.msrb.mxu2 %v218_v42  ;;  %261 = vmatpush.msrb.mxu1 %v185_v47  ;;  %v340_v8 = vld [vmem:[%s970_s5 + $0x48] sm:$0xff]  ;;  %v339_v10 = vld [vmem:[%s970_s5 + $0x40] sm:$0xff]  ;;  %v354_v12 = vld [vmem:[%s970_s5 + $0xb8] sm:$0xff] }
  0x3c   :  { %283 = vmatpush.msrb.mxu3 %v213_v48  ;;  %301 = vmatpush.msrb.mxu0 %v186_v49  ;;  %v84_v11 = vld [vmem:[%s967_s2] sm:$0x3]  ;;  %v338_v14 = vld [vmem:[%s970_s5 + $0x38] sm:$0xff]  ;;  %v353_v15 = vld [vmem:[%s970_s5 + $0xb0] sm:$0xff] }
  0x3d   :  { %322 = vmatpush.msrb.mxu2 %v216_v46  ;;  %262 = vmatpush.msrb.mxu1 %v183_v51  ;;  %v90_v13 = vperm.slane %v84_v11, 0  ;;  %v337_v16 = vld [vmem:[%s970_s5 + $0x30] sm:$0xff]  ;;  %v352_v19 = vld [vmem:[%s970_s5 + $0xa8] sm:$0xff]  ;;  %v91_v22 = vperm.slane %v84_v11, 1  ;;  %v351_v23 = vld [vmem:[%s970_s5 + $0xa0] sm:$0xff] }
  0x3e   :  { %284 = vmatpush.msrb.mxu3 %v211_v52  ;;  %302 = vmatpush.msrb.mxu0 %v184_v53  ;;  %v336_v21 = vld [vmem:[%s970_s5 + $0x28] sm:$0xff]  ;;  %v335_v25 = vld [vmem:[%s970_s5 + $0x20] sm:$0xff]  ;;  %v334_v32 = vld [vmem:[%s970_s5 + $0x18] sm:$0xff] }
  0x3f   :  { %323 = vmatpush.msrb.mxu2 %v214_v50  ;;  %263 = vmatpush.msrb.mxu1 %v181_v55  ;;  %v350_v33 = vld [vmem:[%s970_s5 + $0x98] sm:$0xff]  ;;  %v333_v34 = vld [vmem:[%s970_s5 + $0x10] sm:$0xff]  ;;  %v332_v36 = vld [vmem:[%s970_s5 + $0x8] sm:$0xff] }
  0x40   :  { %303 = vmatpush.msrb.mxu0 %v182_v56  ;;  %384 = vmatpush.msra.mxu3 %v362_v60  ;;  %v349_v35 = vld [vmem:[%s970_s5 + $0x90] sm:$0xff]  ;;  %v348_v37 = vld [vmem:[%s970_s5 + $0x88] sm:$0xff]  ;;  %v331_v38 = vld [vmem:[%s970_s5] sm:$0xff] }
  0x41   :  { %324 = vmatpush.msrb.mxu2 %v212_v54  ;;  %264 = vmatpush.msrb.mxu1 %v179_v57  ;;  %v347_v39 = vld [vmem:[%s970_s5 + $0x80] sm:$0xff] }
  0x42   :  { %304 = vmatpush.msrb.mxu0 %v180_v58  ;;  %385 = vmatpush.msra.mxu3 %v361_v61  ;;  %v243_v40 = vld [vmem:[%s969_s4] sm:$0x3]  ;;  %s451_s4 = smov [#allocation2]  }
  0x43   :  { %364 = vmatpush.msra.mxu1 %v346_v59  ;;  %v245_v41 = vperm.slane %v243_v40, 0  ;;  %v246_v42 = vperm.slane %v243_v40, 1  ;;  %v363_v53 = vld [vmem:[%s971_s6] sm:$0x1]  ;;  %s411_s2 = sshll.u32 %s451_s4, 4  ;;  %s412_s2 = int_to_ptr.vmem [resolvable:$true] %s411_s2 }
  0x44   :  { %386 = vmatpush.msra.mxu3 %v360_v63 }
  0x45   :  { %365 = vmatpush.msra.mxu1 %v345_v62 }
  0x46   :  { %387 = vmatpush.msra.mxu3 %v359_v1 }
  0x47   :  { %366 = vmatpush.msra.mxu1 %v344_v0 }
  0x48   :  { %388 = vmatpush.msra.mxu3 %v358_v3 }
  0x49   :  { %367 = vmatpush.msra.mxu1 %v343_v2 }
  0x4a   :  { %389 = vmatpush.msra.mxu3 %v357_v5 }
  0x4b   :  { %368 = vmatpush.msra.mxu1 %v342_v4 }
  0x4c   :  { %390 = vmatpush.msra.mxu3 %v356_v7 }
  0x4d   :  { %369 = vmatpush.msra.mxu1 %v341_v6 }
  0x4e   :  { %391 = vmatpush.msra.mxu3 %v355_v9 }
  0x4f   :  { %370 = vmatpush.msra.mxu1 %v340_v8 }
  0x50   :  { %392 = vmatpush.msra.mxu3 %v354_v12 }
  0x51   :  { %371 = vmatpush.msra.mxu1 %v339_v10 }
  0x52   :  { %393 = vmatpush.msra.mxu3 %v353_v15 }
  0x53   :  { %372 = vmatpush.msra.mxu1 %v338_v14 }
  0x54   :  { %394 = vmatpush.msra.mxu3 %v352_v19 }
  0x55   :  { %373 = vmatpush.msra.mxu1 %v337_v16 }
  0x56   :  { %395 = vmatpush.msra.mxu3 %v351_v23 }
  0x57   :  { %374 = vmatpush.msra.mxu1 %v336_v21 }
  0x58   :  { %396 = vmatpush.msra.mxu3 %v350_v33 }
  0x59   :  { %375 = vmatpush.msra.mxu1 %v335_v25 }
  0x5a   :  { %397 = vmatpush.msra.mxu3 %v349_v35 }
  0x5b   :  { %376 = vmatpush.msra.mxu1 %v334_v32 }
  0x5c   :  { %398 = vmatpush.msra.mxu3 %v348_v37 }
  0x5d   :  { %377 = vmatpush.msra.mxu1 %v333_v34 }
  0x5e   :  { %399 = vmatpush.msra.mxu3 %v347_v39 }
  0x5f   :  { %378 = vmatpush.msra.mxu1 %v332_v36 }
  0x61   :  { %379 = vmatpush.msra.mxu1 %v331_v38 }
  0x9d   :  { %v134_v18 = vpop.f32.mrf.mxu1 }
  0x9e   :  { %v174_v27 = vpop.f32.mrf.mxu3 }
  0x9f   :  { %v114_v17 = vpop.f32.mrf.mxu0 }
  0xa0   :  { %v115_v20 = vadd.f32 %v114_v17, %v90_v13 }
  0xa2   :  { %v135_v24 = vadd.f32 %v134_v18, %v115_v20 }
  0xa4   :  { %v154_v26 = vpop.f32.mrf.mxu2  ;;  %v177_v28 = vmax.f32 %v135_v24, 0.0 }
  0xa5   :  { %v155_v29 = vadd.f32 %v154_v26, %v91_v22 }
  0xa6   :  { %265 = vmatmul.f32.vlgmr.msrb.gmra.mxu1 %v177_v28  ;;  %305 = vmatmul.f32.vlgmr.msrb.gmra.mxu0 %v177_v28 }
  0xa7   :  { %v175_v30 = vadd.f32 %v174_v27, %v155_v29 }
  0xa9   :  { %v178_v31 = vmax.f32 %v175_v30, 0.0 }
  0xab   :  { %285 = vmatmul.f32.vlgmr.msrb.gmra.mxu3 %v178_v31  ;;  %325 = vmatmul.f32.vlgmr.msrb.gmra.mxu2 %v178_v31 }
 0x123   :  { %v266_v43 = vpop.f32.mrf.mxu1  ;;  %v306_v44 = vpop.f32.mrf.mxu0 }
 0x124   :  { %v267_v45 = vadd.f32 %v266_v43, %v245_v41  ;;  %v307_v46 = vadd.f32 %v306_v44, %v246_v42 }
 0x12e   :  { %v286_v47 = vpop.f32.mrf.mxu3  ;;  %v326_v48 = vpop.f32.mrf.mxu2 }
 0x12f   :  { %v287_v49 = vadd.f32 %v286_v47, %v267_v45  ;;  %v327_v50 = vadd.f32 %v326_v48, %v307_v46 }
 0x131   :  { %v329_v51 = vmax.f32 %v287_v49, 0.0  ;;  %v330_v52 = vmax.f32 %v327_v50, 0.0 }
 0x133   :  { %380 = vmatmul.f32.vlgmr.msra.gmra.mxu1 %v329_v51  ;;  %400 = vmatmul.f32.vlgmr.msra.gmra.mxu3 %v330_v52 }
 0x1b0   :  { %v381_v54 = vpop.f32.mrf.mxu1 }
 0x1b1   :  { %v382_v55 = vadd.f32 %v381_v54, %v363_v53 }
 0x1b6   :  { %v401_v56 = vpop.f32.mrf.mxu3 }
 0x1b7   :  { %v402_v57 = vadd.f32 %v401_v56, %v382_v55 }
 0x1b9   :  { %405 = vst.msk [vmem:[#allocation2] sm:$0x1] %vm404_vm1, %v402_v57 }
 0x1ba   :  { %416 = dma.vmem_to_hbm [thread:$0]  %s412_s2, 16, %s414_s17, [#allocation3]  }
 0x1bb   :  { %449 = dma.done.wait [#allocation3], 16  }
 0x1bc   :  { %450 = vsyncadd [#allocation3], 4294967280 }
 0x1bd   :  { %421 = vsyncpa [#allocation3], 1 }

</bundles_post_ra>
